<compile_context>
chip_gen: v6e
topology: v6e:2x2x1
jax: 0.10.0
libtpu: 0.0.40
codegen_flags: <defaults>
</compile_context>

<pallas_src>
import math
import re

import jax
import jax.numpy as jnp
from jax.experimental import pallas as pl
from jax.experimental.pallas import tpu as pltpu


def _round_up(v, m):
    return (v + m - 1) // m * m


# -----------------------------------------------------------------------------
# Kernel body
# -----------------------------------------------------------------------------
def _discriminator_kernel(x_ref, s_ref, w_ref, o_ref):
    # Grid: (i = batch row tile [parallel], j = weight column tile [arbitrary]).
    # The (1, TM) output block is indexed only by i, so it stays resident in
    # VMEM across the whole j sweep and we accumulate in place.
    @pl.when(pl.program_id(1) == 0)
    def _init():
        o_ref[...] = jnp.zeros_like(o_ref)

    # MXU: (TM, Hp) @ (Hp, TN), always accumulating in f32.
    h = jnp.dot(s_ref[...], w_ref[...], preferred_element_type=jnp.float32)
    # VPU: elementwise product with the matching x columns, then row reduce (XLU).
    prod = x_ref[...].astype(jnp.float32) * h
    partial_rowsum = jnp.sum(prod, axis=1)
    # Lane-dense accumulate into the (1, TM) output tile.
    o_ref[...] += partial_rowsum[None, :].astype(o_ref.dtype)


# -----------------------------------------------------------------------------
# Host-side helpers
# -----------------------------------------------------------------------------
def _tpu_hw_info():
    """Return (vmem_capacity_bytes, mxu_width, cores_per_chip) with safe fallbacks."""
    kind = ""
    try:
        kind = jax.devices()[0].device_kind.lower()
    except Exception:
        pass
    m = re.search(r"(\d+)", kind)
    gen = int(m.group(1)) if m else 0

    vmem = None
    try:
        vmem = int(pltpu.get_tpu_info().vmem_capacity_bytes)
    except Exception:
        vmem = None
    if not vmem or vmem <= 0:
        # v4/v5e/v6e: 128 MiB VMEM per TensorCore; v7x: 64 MiB.  Unknown -> safe 64 MiB.
        vmem = (64 << 20) if (gen >= 7 or gen == 0) else (128 << 20)

    mxu_width = 256 if gen >= 6 else 128      # v6e/v7x MXU is 2x256x256, v5e is 4x128x128
    cores_per_chip = 2 if gen >= 7 else 1     # v7x has 2 TensorCores / chip
    return vmem, mxu_width, cores_per_chip


def _vmem_estimate(tm, tn, hp, act_isize, w_isize):
    x_tiles = 2 * tm * tn * act_isize         # double-buffered x block
    s_tiles = 2 * tm * hp * act_isize         # double-buffered summary block
    w_tiles = 2 * hp * tn * w_isize           # double-buffered weight block
    out_tile = 2 * tm * 4                     # (1, TM) f32 accumulator
    inter = 2 * tm * tn * 4                   # h + prod f32 intermediates (Mosaic staging)
    return x_tiles + s_tiles + w_tiles + out_tile + inter


def _pick_tiles(n, hp, act_isize, w_isize, budget, mxu_width, cores):
    # Row-tile upper bound: exploit the 128 MiB parts, but keep >= `cores` row
    # tiles so the "parallel" i axis gives work to every TensorCore (v7x).
    tm_hi = 1024 if budget >= (96 << 20) else 512
    if cores > 1 and n > 128:
        tm_hi = min(tm_hi, max(128, _round_up(pl.cdiv(n, cores), 128)))
    if n <= tm_hi:
        tm_hi = n   # single row tile equal to the full batch dim (always a legal block)

    # Column-tile candidates: full Hp first (weight resident, no reduction loop),
    # then multiples of the MXU width, then the 128-lane minimum.
    cands = [hp]
    t = (hp // mxu_width) * mxu_width
    while t >= mxu_width:
        if hp % t == 0 and t not in cands:
            cands.append(t)
        t -= mxu_width
    if 128 not in cands and hp % 128 == 0:
        cands.append(128)

    for tn in cands:
        tm = tm_hi
        while True:
            if _vmem_estimate(tm, tn, hp, act_isize, w_isize) <= budget:
                return tm, tn
            if tm <= 128:
                break
            tm = max(128, ((tm - 1) // 128) * 128)   # next lower multiple of 128
    return (tm_hi if tm_hi <= 128 else 128), 128


# -----------------------------------------------------------------------------
# Forward
# -----------------------------------------------------------------------------
def discriminator_forward(x, summary, weight, *, compute_dtype=jnp.float32,
                          allow_small_fast_path=False):
    """x: (N, H), summary: (N, H), weight: (H, H) -> (N,) float32.

    compute_dtype: operand dtype held in HBM/VMEM.  float32 (default) matches
      PyTorch numerics exactly; jnp.bfloat16 gives ~3x MXU throughput and half
      the HBM bytes at a small numeric delta (accumulation stays f32).
    """
    N, H = x.shape
    assert summary.shape == (N, H)
    assert weight.shape == (H, H)

    out_dtype = jnp.float32

    # Optional tiny-problem fast path (pallas_call fixed overhead dominates).
    # Off by default so the Pallas kernel path is always exercised.
    if allow_small_fast_path and N * max(H, 128) <= 128 * 128:
        h = jnp.dot(summary.astype(out_dtype), weight.astype(out_dtype))
        return jnp.sum(x.astype(out_dtype) * h, axis=1)

    vmem_cap, mxu_width, cores = _tpu_hw_info()
    budget = vmem_cap - max(8 << 20, vmem_cap // 8)   # ~56 MiB on v7x, ~112 MiB on v5e/v6e

    act_dtype = compute_dtype
    w_dtype = compute_dtype
    act_isize = jnp.dtype(act_dtype).itemsize
    w_isize = jnp.dtype(w_dtype).itemsize

    # Feature axis: only pad (host copy) when H is not 128-lane aligned.  The
    # weight pad must be zero in BOTH padded rows and columns so padded lanes
    # contribute exactly zero.
    if H % 128 != 0:
        Hp = _round_up(H, mxu_width)
        x_in = jnp.zeros((N, Hp), act_dtype).at[:, :H].set(x.astype(act_dtype))
        s_in = jnp.zeros((N, Hp), act_dtype).at[:, :H].set(summary.astype(act_dtype))
        w_in = jnp.zeros((Hp, Hp), w_dtype).at[:H, :H].set(weight.astype(w_dtype))
    else:
        Hp = H
        x_in = x.astype(act_dtype)
        s_in = summary.astype(act_dtype)
        w_in = weight.astype(w_dtype)

    TM, TN = _pick_tiles(N, Hp, act_isize, w_isize, budget, mxu_width, cores)

    n_i = pl.cdiv(N, TM)     # batch row tiles (last may be partial; writes are masked)
    n_j = Hp // TN           # reduction tiles over the weight output columns
    grid = (n_i, n_j)

    est = _vmem_estimate(TM, TN, Hp, act_isize, w_isize)
    vmem_limit = int(min(vmem_cap, max(est + (16 << 20), 32 << 20)))

    # Weight blocks are re-fetched once per row tile when column-tiled; x/summary
    # are each read once in total.
    weight_bytes = Hp * Hp * w_isize * (n_i if n_j > 1 else 1)
    cost = pl.CostEstimate(
        flops=2 * N * Hp * Hp + 2 * N * Hp,
        transcendentals=0,
        bytes_accessed=int(2 * N * Hp * act_isize + weight_bytes + N * 4),
    )

    out2d = pl.pallas_call(
        _discriminator_kernel,
        out_shape=jax.ShapeDtypeStruct((1, N), out_dtype),
        grid_spec=pltpu.PrefetchScalarGridSpec(
            num_scalar_prefetch=0,
            grid=grid,
            in_specs=[
                pl.BlockSpec((TM, TN), lambda i, j: (i, j)),   # x: cols follow W's column tile
                pl.BlockSpec((TM, Hp), lambda i, j: (i, 0)),   # summary: full contraction dim
                pl.BlockSpec((Hp, TN), lambda i, j: (0, j)),   # weight: column tile
            ],
            out_specs=pl.BlockSpec((1, TM), lambda i, j: (0, i)),  # lane-dense, resident over j
        ),
        compiler_params=pltpu.CompilerParams(
            dimension_semantics=("parallel", "arbitrary"),
            vmem_limit_bytes=vmem_limit,
        ),
        cost_estimate=cost,
    )(x_in, s_in, w_in)

    return out2d[0]


def init_weight(key, hidden_dim, dtype=jnp.float32):
    # Mirrors `uniform(size, weight)`: U(-1/sqrt(size), 1/sqrt(size)).
    bound = 1.0 / math.sqrt(hidden_dim)
    return jax.random.uniform(
        key, (hidden_dim, hidden_dim), dtype=dtype, minval=-bound, maxval=bound
    )


if __name__ == "__main__":
    N, H = 8, 32  # batch of node embeddings, hidden_dim

    key = jax.random.PRNGKey(0)
    k_w, k_x, k_s = jax.random.split(key, 3)

    weight = init_weight(k_w, H)
    x = jax.random.normal(k_x, (N, H), dtype=jnp.float32)
    summary = jax.random.normal(k_s, (N, H), dtype=jnp.float32)

    out = discriminator_forward(x, summary, weight)
    out = jax.block_until_ready(out)

    # Sanity-check against the pure-JAX reference of the PyTorch forward.
    ref = jnp.sum(x * (summary @ weight), axis=1)
    assert out.shape == (N,)
    assert jnp.allclose(out, ref, atol=1e-4, rtol=1e-4)

    print("KERNEL_OK")
</pallas_src>

<mosaic_0001>
module attributes {stable_mosaic.version = 11 : i64} {
  func.func @_discriminator_kernel(%arg0: i32, %arg1: i32, %arg2: memref<8x128xf32, #tpu.memory_space<vmem>>, %arg3: memref<8x128xf32, #tpu.memory_space<vmem>>, %arg4: memref<128x128xf32, #tpu.memory_space<vmem>>, %arg5: memref<1x8xf32, #tpu.memory_space<vmem>>) attributes {dimension_semantics = [#tpu.dimension_semantics<parallel>, #tpu.dimension_semantics<arbitrary>], iteration_bounds = array<i64: 1, 1>, scalar_prefetch = 0 : i64, scratch_operands = 0 : i64, tpu.core_type = #tpu.core_type<tc>, window_params = [{transform_indices = @transform_0, window_bounds = array<i64: 8, 128>}, {transform_indices = @transform_1, window_bounds = array<i64: 8, 128>}, {transform_indices = @transform_2, window_bounds = array<i64: 128, 128>}, {transform_indices = @transform_3, window_bounds = array<i64: 1, 8>}]} {
    %c0_i32 = arith.constant 0 : i32
    %0 = arith.cmpi eq, %arg1, %c0_i32 : i32
    %1 = arith.extui %0 : i1 to i32
    %c0_i32_0 = arith.constant 0 : i32
    %2 = arith.cmpi ne, %1, %c0_i32_0 : i32
    scf.if %2 {
      %cst_11 = arith.constant 0.000000e+00 : f32
      %13 = vector.broadcast %cst_11 : f32 to vector<1x8xf32>
      %c0_12 = arith.constant 0 : index
      %c0_13 = arith.constant 0 : index
      %14 = vector.load %arg5[%c0_12, %c0_13] : memref<1x8xf32, #tpu.memory_space<vmem>>, vector<1x8xf32>
      tpu.vector_store %arg5[%c0_12, %c0_13], %13 {strides = array<i32>} : memref<1x8xf32, #tpu.memory_space<vmem>>, vector<1x8xf32>,
    } else {
    }
    %c0 = arith.constant 0 : index
    %c0_1 = arith.constant 0 : index
    %3 = vector.load %arg3[%c0, %c0_1] : memref<8x128xf32, #tpu.memory_space<vmem>>, vector<8x128xf32>
    %c0_2 = arith.constant 0 : index
    %c0_3 = arith.constant 0 : index
    %4 = vector.load %arg4[%c0_2, %c0_3] : memref<128x128xf32, #tpu.memory_space<vmem>>, vector<128x128xf32>
    %cst = arith.constant dense<0.000000e+00> : vector<8x128xf32>
    %5 = tpu.matmul %3, %4, %cst {dimension_numbers = #tpu.dot_dimension_numbers<[1], [0], [0], [1], [0, 0, 1, 1], [], []>} : vector<8x128xf32>, vector<128x128xf32>, vector<8x128xf32> -> vector<8x128xf32>
    %c0_4 = arith.constant 0 : index
    %c0_5 = arith.constant 0 : index
    %6 = vector.load %arg2[%c0_4, %c0_5] : memref<8x128xf32, #tpu.memory_space<vmem>>, vector<8x128xf32>
    %7 = arith.mulf %6, %5 : vector<8x128xf32>
    %cst_6 = arith.constant dense<0.000000e+00> : vector<8xf32>
    %8 = vector.multi_reduction <add>, %7, %cst_6 [1] : vector<8x128xf32> to vector<8xf32>
    %c0_7 = arith.constant 0 : index
    %c0_8 = arith.constant 0 : index
    %9 = vector.load %arg5[%c0_7, %c0_8] : memref<1x8xf32, #tpu.memory_space<vmem>>, vector<1x8xf32>
    %10 = vector.shape_cast %8 : vector<8xf32> to vector<1x8xf32>
    %11 = arith.addf %9, %10 : vector<1x8xf32>
    %c0_9 = arith.constant 0 : index
    %c0_10 = arith.constant 0 : index
    %12 = vector.load %arg5[%c0_9, %c0_10] : memref<1x8xf32, #tpu.memory_space<vmem>>, vector<1x8xf32>
    tpu.vector_store %arg5[%c0_9, %c0_10], %11 {strides = array<i32>} : memref<1x8xf32, #tpu.memory_space<vmem>>, vector<1x8xf32>,
    return
  }
  func.func @transform_0(%arg0: i32, %arg1: i32) -> (i32, i32) {
    %c0_i32 = arith.constant 0 : i32
    return %arg0, %arg1 : i32, i32
  }
  func.func @transform_1(%arg0: i32, %arg1: i32) -> (i32, i32) {
    %c0_i32 = arith.constant 0 : i32
    %c0_i32_0 = arith.constant 0 : i32
    return %arg0, %c0_i32 : i32, i32
  }
  func.func @transform_2(%arg0: i32, %arg1: i32) -> (i32, i32) {
    %c0_i32 = arith.constant 0 : i32
    %c0_i32_0 = arith.constant 0 : i32
    return %c0_i32, %arg1 : i32, i32
  }
  func.func @transform_3(%arg0: i32, %arg1: i32) -> (i32, i32) {
    %c0_i32 = arith.constant 0 : i32
    %c0_i32_0 = arith.constant 0 : i32
    return %c0_i32, %arg0 : i32, i32
  }
}

</mosaic_0001>

<bundles_post_ra>
// kernel: tpu_custom_call.1
= control target key start
LH: loop header
LB: loop body
LE: loop exit
PB: predicated region body
PF: predicated region fallthrough
CT: control target
= control target key end

     0   :  { %8 = vsyncpa [#allocation3], 0  ;;  %s486_s0 = inlined_call_operand.hbm [shape: f32[8,128], index: 0, kind: input, shape index: {}]   ;;  %s487_s1 = inlined_call_operand.hbm [shape: f32[8,128], index: 1, kind: input, shape index: {}]   ;;  %s488_s2 = inlined_call_operand.hbm [shape: f32[128,128], index: 2, kind: input, shape index: {}]   ;;  %s489_s3 = inlined_call_operand.hbm [shape: f32[1,8], index: 3, kind: output, shape index: {}]  }
   0x1   :  { %9 = vsyncpa [#allocation6], 0 }
   0x2   :  { %10 = vsyncpa [#allocation4], 0  ;;  %s424_s12 = smov [#allocation5]   ;;  %s425_s14 = smov [#allocation2]  }
   0x3   :  { %s27_s13 = sshll.u32 %s424_s12, 4  ;;  %s17_s15 = sshll.u32 %s425_s14, 4  ;;  %s28_s13 = int_to_ptr.vmem [resolvable:$true] %s27_s13  ;;  %s18_s15 = int_to_ptr.vmem [resolvable:$true] %s17_s15 }
   0x4   :  { %s346_s16 = scalar_lea.vmem %s28_s13, 128  ;;  %p351_p1 = scmp.lt.s32.totalorder %s28_s13, %s28_s13 }
   0x5   :  { %p347_p0 = scmp.ne.s32.totalorder %s28_s13, %s346_s16  ;;  %p352_p2 = scmp.lt.s32.totalorder %s346_s16, %s346_s16 }
   0x7   :  { %p353_p3 = por %p352_p2, %p351_p1 }
   0x9   :  { %p354_p4 = pnand %p353_p3, %p347_p0 }
   0xb   :  { %357 = shalt.err (!%p354_p4)
}
   0xc   :  { %30 = dma.hbm_to_vmem [thread:$0]  %s487_s1, 128, %s28_s13, [#allocation6]  }
   0xd   :  { %s366_s19 = scalar_lea.vmem %s18_s15, 128  ;;  %p371_p6 = scmp.lt.s32.totalorder %s18_s15, %s18_s15 }
   0xe   :  { %p367_p5 = scmp.ne.s32.totalorder %s18_s15, %s366_s19  ;;  %p372_p7 = scmp.lt.s32.totalorder %s366_s19, %s366_s19 }
  0x10   :  { %p373_p8 = por %p372_p7, %p371_p6 }
  0x12   :  { %p374_p9 = pnand %p373_p8, %p367_p5 }
  0x14   :  { %377 = shalt.err (!%p374_p9)
}
  0x15   :  { %20 = dma.hbm_to_vmem [thread:$0]  %s486_s0, 128, %s18_s15, [#allocation3]  }
  0x16   :  { %s426_s22 = smov [#allocation7]  }
  0x17   :  { %s36_s23 = sshll.u32 %s426_s22, 4  ;;  %s37_s23 = int_to_ptr.vmem [resolvable:$true] %s36_s23 }
  0x18   :  { %s386_s24 = scalar_lea.vmem %s37_s23, 2048  ;;  %p391_p11 = scmp.lt.s32.totalorder %s37_s23, %s37_s23 }
  0x19   :  { %p387_p10 = scmp.ne.s32.totalorder %s37_s23, %s386_s24  ;;  %p392_p12 = scmp.lt.s32.totalorder %s386_s24, %s386_s24 }
  0x1b   :  { %p393_p13 = por %p392_p12, %p391_p11 }
  0x1d   :  { %p394_p0 = pnand %p393_p13, %p387_p10 }
  0x1f   :  { %397 = shalt.err (!%p394_p0)
}
  0x20   :  { %s427_s1 = smov 128   ;;  %s428_s25 = smov 8  }
  0x21   :  { %42 = dma.hbm_to_vmem [thread:$0]  %s488_s2, 2048, %s37_s23, [#allocation6], %s427_s1, %s427_s1, %s428_s25  }
  0x22   :  { %418 = dma.done.wait [#allocation3], 128  }
  0x23   :  { %419 = vsyncadd [#allocation3], 4294967168 }
  0x24   :  { %420 = dma.done.wait [#allocation6], 2176  }
  0x25   :  { %421 = vsyncadd [#allocation6], 4294965120  ;;  %v429_v0 = vmov 0.0   ;;  %vm430_vm0 = vmmov 0   ;;  %v74_v1 = vld [vmem:[#allocation7 + $0x78] sm:$0xff]  ;;  %v73_v2 = vld [vmem:[#allocation7 + $0x70] sm:$0xff]  ;;  %v151_v23 = vlaneseq }
  0x26   :  { %292 = vmatprep.subr.mxu0 %v429_v0  ;;  %324 = vmatprep.mubr.msk.f32.mxu0 %vm430_vm0, %v429_v0  ;;  %v72_v3 = vld [vmem:[#allocation7 + $0x68] sm:$0xff]  ;;  %v71_v4 = vld [vmem:[#allocation7 + $0x60] sm:$0xff]  ;;  %v70_v5 = vld [vmem:[#allocation7 + $0x58] sm:$0xff]  ;;  %v431_v22 = vmov 0   ;;  %vm56_vm1 = vcmask 57344   ;;  %s433_s0 = smov [#allocation8]  }
  0x27   :  { %293 = vmatpush3.msra.mxu0 %v74_v1  ;;  %v69_v6 = vld [vmem:[#allocation7 + $0x50] sm:$0xff]  ;;  %v68_v7 = vld [vmem:[#allocation7 + $0x48] sm:$0xff]  ;;  %v67_v8 = vld [vmem:[#allocation7 + $0x40] sm:$0xff]  ;;  %337 = vset.pattern.permute.xlu0 %v431_v22  ;;  %v152_v24 = vshrl.u32 %v151_v23, 7  ;;  %v236_v25 = vand.u32 127, %v151_v23  ;;  %s265_s2 = sshll.u32 %s433_s0, 4  ;;  %s266_s2 = int_to_ptr.vmem [resolvable:$true] %s265_s2 }
  0x28   :  { %294 = vmatprep.subr.mxu0 %v429_v0  ;;  %v66_v9 = vld [vmem:[#allocation7 + $0x38] sm:$0xff]  ;;  %v65_v10 = vld [vmem:[#allocation7 + $0x30] sm:$0xff]  ;;  %v64_v11 = vld [vmem:[#allocation7 + $0x28] sm:$0xff]  ;;  %57 = vst.msk [vmem:[#allocation8] sm:$0x1] %vm56_vm1, %v429_v0  ;;  %s398_s28 = scalar_lea.vmem %s266_s2, 16  ;;  %p403_p2 = scmp.lt.s32.totalorder %s266_s2, %s266_s2 }
  0x29   :  { %295 = vmatpush3.msra.mxu0 %v73_v2  ;;  %v63_v12 = vld [vmem:[#allocation7 + $0x20] sm:$0xff]  ;;  %v62_v13 = vld [vmem:[#allocation7 + $0x18] sm:$0xff]  ;;  %v61_v14 = vld [vmem:[#allocation7 + $0x10] sm:$0xff]  ;;  %v239_v26 = vsub.s32 %v236_v25, %v152_v24  ;;  %v432_v27 = vmov 1966171168   ;;  %v153_v30 = vsub.s32 0, %v152_v24  ;;  %p399_p1 = scmp.ne.s32.totalorder %s266_s2, %s398_s28 }
  0x2a   :  { %296 = vmatprep.subr.mxu0 %v429_v0  ;;  %v60_v15 = vld [vmem:[#allocation7 + $0x8] sm:$0xff]  ;;  %v59_v16 = vld [vmem:[#allocation7] sm:$0xff]  ;;  %v58_v17 = vld [vmem:[#allocation5] sm:$0xff]  ;;  %v188_v28 = vunpack.c.l.s4 %v432_v27  ;;  %v157_v31 = vsub.s32 1, %v152_v24  ;;  %v161_v32 = vsub.s32 2, %v152_v24  ;;  %v165_v33 = vsub.s32 3, %v152_v24 }
  0x2b   :  { %297 = vmatpush3.msra.mxu0 %v72_v3  ;;  %v145_v18 = vld [vmem:[#allocation2] sm:$0xff]  ;;  %v169_v34 = vsub.s32 4, %v152_v24  ;;  %v173_v35 = vsub.s32 5, %v152_v24  ;;  %v177_v36 = vsub.s32 6, %v152_v24  ;;  %v181_v37 = vsub.s32 7, %v152_v24  ;;  %s402_s29 = scalar_lea.vmem %s266_s2, 32 }
  0x2c   :  { %298 = vmatprep.subr.mxu0 %v429_v0  ;;  %v189_v29 = vunpack.c.0.s8 %v188_v28  ;;  %p404_p3 = scmp.lt.s32.totalorder %s402_s29, %s398_s28 }
  0x2d   :  { %299 = vmatpush3.msra.mxu0 %v71_v4 }
  0x2e   :  { %300 = vmatprep.subr.mxu0 %v429_v0  ;;  %v192_v39 = vsub.s32 %v189_v29, %v152_v24  ;;  %p405_p4 = por %p404_p3, %p403_p2 }
  0x2f   :  { %301 = vmatpush3.msra.mxu0 %v70_v5 }
  0x30   :  { %302 = vmatprep.subr.mxu0 %v429_v0  ;;  %p406_p5 = pnand %p405_p4, %p399_p1 }
  0x31   :  { %303 = vmatpush3.msra.mxu0 %v69_v6 }
  0x32   :  { %304 = vmatprep.subr.mxu0 %v429_v0 }
  0x33   :  { %305 = vmatpush3.msra.mxu0 %v68_v7 }
  0x34   :  { %306 = vmatprep.subr.mxu0 %v429_v0 }
  0x35   :  { %307 = vmatpush3.msra.mxu0 %v67_v8 }
  0x36   :  { %308 = vmatprep.subr.mxu0 %v429_v0 }
  0x37   :  { %309 = vmatpush3.msra.mxu0 %v66_v9 }
  0x38   :  { %310 = vmatprep.subr.mxu0 %v429_v0 }
  0x39   :  { %311 = vmatpush3.msra.mxu0 %v65_v10 }
  0x3a   :  { %312 = vmatprep.subr.mxu0 %v429_v0 }
  0x3b   :  { %313 = vmatpush3.msra.mxu0 %v64_v11 }
  0x3c   :  { %314 = vmatprep.subr.mxu0 %v429_v0 }
  0x3d   :  { %315 = vmatpush3.msra.mxu0 %v63_v12 }
  0x3e   :  { %316 = vmatprep.subr.mxu0 %v429_v0 }
  0x3f   :  { %317 = vmatpush3.msra.mxu0 %v62_v13 }
  0x40   :  { %318 = vmatprep.subr.mxu0 %v429_v0 }
  0x41   :  { %319 = vmatpush3.msra.mxu0 %v61_v14 }
  0x42   :  { %320 = vmatprep.subr.mxu0 %v429_v0 }
  0x43   :  { %321 = vmatpush3.msra.mxu0 %v60_v15 }
  0x44   :  { %322 = vmatprep.subr.mxu0 %v429_v0  ;;  %v149_v0 = vld [vmem:[#allocation8] sm:$0x1] }
  0x45   :  { %323 = vmatpush3.msra.mxu0 %v59_v16 }
  0x46   :  { %325 = vmatmul.mubr.f32.vlgmr.msra.gmra.mxu0 %v58_v17 }
 0x106   :  { %v141_v19 = vpop.f32.mrf.mxu0 }
 0x107   :  { %v146_v20 = vmul.f32 %v145_v18, %v141_v19 }
 0x108   :  { %v326_v21 = vpop.f32.mrf.mxu0 }
 0x109   :  { %147 = vadd.xlane.f32.xlu0 %v146_v20 }
 0x192   :  { %v148_v38 = vpop.xlane.xlu0 %147 }
 0x193   :  { %v154_v40 = vrot.slane %v148_v38, %v153_v30  ;;  %v158_v41 = vrot.slane %v148_v38, %v157_v31  ;;  %v162_v42 = vrot.slane %v148_v38, %v161_v32  ;;  %v166_v43 = vrot.slane %v148_v38, %v165_v33 }
 0x194   :  { %v170_v44 = vrot.slane %v148_v38, %v169_v34  ;;  %v174_v45 = vrot.slane %v148_v38, %v173_v35  ;;  %v178_v46 = vrot.slane %v148_v38, %v177_v36  ;;  %v182_v47 = vrot.slane %v148_v38, %v181_v37 }
 0x195   :  { %v183_v48 = vcombine.low %v154_v40, %v158_v41  ;;  %v184_v49 = vcombine.low %v162_v42, %v166_v43 }
 0x196   :  { %v185_v50 = vcombine.low %v170_v44, %v174_v45  ;;  %v186_v51 = vcombine.low %v178_v46, %v182_v47 }
 0x197   :  { %v193_v52 = vrot.slane %v183_v48, %v192_v39  ;;  %v200_v53 = vrot.slane %v184_v49, %v192_v39 }
 0x198   :  { %v207_v54 = vrot.slane %v185_v50, %v192_v39  ;;  %v214_v55 = vrot.slane %v186_v51, %v192_v39 }
 0x199   :  { %v215_v56 = vcombine.low %v193_v52, %v200_v53 }
 0x19a   :  { %v216_v57 = vcombine.low %v207_v54, %v214_v55 }
 0x19b   :  { %v223_v58 = vrot.slane %v215_v56, %v192_v39 }
 0x19c   :  { %v230_v59 = vrot.slane %v216_v57, %v192_v39 }
 0x19e   :  { %v231_v60 = vcombine.low %v223_v58, %v230_v59 }
 0x1a0   :  { %233 = vperm.xlu0 %337, %v231_v60  }
 0x21b   :  { %v234_v61 = vpop.permute.xlu0 %233 }
 0x21c   :  { %v240_v62 = vrot.slane %v234_v61, %v239_v26 }
 0x21e   :  { %v247_v63 = vrot.slane %v240_v62, %v192_v39 }
 0x220   :  { %v254_v1 = vrot.slane %v247_v63, %v192_v39 }
 0x222   :  { %v256_v2 = vadd.f32 %v254_v1, %v149_v0 }
 0x224   :  { %258 = vst.msk [vmem:[#allocation8] sm:$0x1] %vm56_vm1, %v256_v2 }
 0x225   :  { %409 = shalt.err (!%p406_p5)
}
 0x226   :  { %268 = dma.vmem_to_hbm [thread:$0]  %s266_s2, 16, %s489_s3, [#allocation4]  }
 0x227   :  { %422 = dma.done.wait [#allocation4], 16  }
 0x228   :  { %423 = vsyncadd [#allocation4], 4294967280 }
 0x229   :  { %272 = vsyncpa [#allocation3], 1 }
 0x22a   :  { %273 = vsyncpa [#allocation6], 1 }
 0x22b   :  { %274 = vsyncpa [#allocation4], 1 }

</bundles_post_ra>
